<compile_context>
chip_gen: v5e
topology: v5e:2x2
jax: 0.10.0
libtpu: 0.0.40
codegen_flags: <defaults>
</compile_context>

<pallas_src>
import functools

import jax
import jax.numpy as jnp
from jax.experimental import pallas as pl
from jax.experimental.pallas import tpu as pltpu


def _round_up(n, m):
    return ((n + m - 1) // m) * m


def _center_loss_kernel(labels_ref, x_ref, centers_hbm, out_ref, cbuf, sems, *,
                        n_valid):
    # labels_ref : (Bp,) int32 in SMEM (scalar prefetch)
    # x_ref      : (block_b, D) VMEM tile of features
    # centers_hbm: (C, D) raw HBM ref (memory_space=pl.ANY)
    # out_ref    : (block_b, 1) f32 per-row clamped squared distance
    # cbuf       : (block_b, D) VMEM scratch for the gathered centers rows
    # sems       : (block_b,) DMA semaphores
    i = pl.program_id(0)
    block_b = cbuf.shape[0]
    base = i * block_b

    # Gather centers[labels[base + b]] row-by-row: start every DMA, then wait,
    # so all the small row copies overlap in the DMA engine.
    def _start(b, carry):
        lbl = jnp.maximum(labels_ref[base + b], 0)      # padded rows -> row 0
        pltpu.make_async_copy(centers_hbm.at[pl.ds(lbl, 1), :],
                              cbuf.at[pl.ds(b, 1), :],
                              sems.at[b]).start()
        return carry

    jax.lax.fori_loop(0, block_b, _start, 0, unroll=True)

    def _wait(b, carry):
        pltpu.make_async_copy(centers_hbm.at[pl.ds(0, 1), :],
                              cbuf.at[pl.ds(b, 1), :],
                              sems.at[b]).wait()
        return carry

    jax.lax.fori_loop(0, block_b, _wait, 0, unroll=True)

    x = x_ref[...].astype(jnp.float32)
    c = cbuf[...].astype(jnp.float32)
    diff = x - c
    dist = jnp.sum(diff * diff, axis=1, keepdims=True)          # (block_b, 1)
    dist = jnp.clip(dist, 1e-12, 1e12)

    # Zero out rows that are pure batch padding (row index >= true batch).
    row = jax.lax.broadcasted_iota(jnp.int32, (block_b, 1), 0) + base
    valid = (row < n_valid).astype(jnp.float32)
    out_ref[...] = dist * valid


def center_loss(x, centers, labels, *, block_b=None):
    """x: (B, D) float, centers: (C, D) float, labels: (B,) int -> scalar f32."""
    B, D = x.shape
    C, Dc = centers.shape
    assert D == Dc

    if block_b is None:
        # Aim for >=2 B-tiles (megacore sharding on v7x), cap tile at 128 rows.
        block_b = max(8, min(128, _round_up(pl.cdiv(B, 2), 8)))
    block_b = _round_up(block_b, 8)
    Bp = _round_up(B, block_b)
    n_tiles = Bp // block_b

    # Pad only when needed (avoids full HBM copies in the aligned case).
    labels_i32 = labels.astype(jnp.int32)
    if Bp != B:
        xp = jnp.zeros((Bp, D), x.dtype).at[:B].set(x)
        lp = jnp.zeros((Bp,), jnp.int32).at[:B].set(labels_i32)
    else:
        xp = x
        lp = labels_i32

    bytes_accessed = int(Bp * D * x.dtype.itemsize            # x tiles
                         + Bp * D * centers.dtype.itemsize    # gathered rows
                         + Bp * 4)                            # per-row output

    per_row = pl.pallas_call(
        functools.partial(_center_loss_kernel, n_valid=B),
        out_shape=jax.ShapeDtypeStruct((Bp, 1), jnp.float32),
        grid_spec=pltpu.PrefetchScalarGridSpec(
            num_scalar_prefetch=1,
            grid=(n_tiles,),
            in_specs=[
                pl.BlockSpec((block_b, D), lambda i, lbl: (i, 0)),
                pl.BlockSpec(memory_space=pl.ANY),    # centers stay in HBM
            ],
            out_specs=pl.BlockSpec((block_b, 1), lambda i, lbl: (i, 0)),
            scratch_shapes=[
                pltpu.VMEM((block_b, D), centers.dtype),
                pltpu.SemaphoreType.DMA((block_b,)),
            ],
        ),
        compiler_params=pltpu.CompilerParams(
            dimension_semantics=("parallel",)),
        cost_estimate=pl.CostEstimate(
            flops=int(3 * Bp * D),
            transcendentals=0,
            bytes_accessed=bytes_accessed),
    )(lp, xp, centers)

    # Every masked-out (b, c) entry of the PyTorch formulation contributes
    # exactly clamp(0) = 1e-12; add that analytically to preserve parity.
    pad_const = jnp.float32(B * (C - 1) * 1e-12)
    return (jnp.sum(per_row) + pad_const) * jnp.float32(1.0 / B)


def center_loss_ref(x, centers, labels):
    """Pure-JAX reference mirroring the PyTorch forward (expanded distmat)."""
    B = x.shape[0]
    C = centers.shape[0]
    xc = jnp.dot(x, centers.T, precision=jax.lax.Precision.HIGHEST)
    distmat = (jnp.sum(x ** 2, axis=1, keepdims=True)
               + jnp.sum(centers ** 2, axis=1, keepdims=True).T
               - 2.0 * xc)
    mask = (labels[:, None] == jnp.arange(C)[None, :]).astype(jnp.float32)
    dist = jnp.clip(distmat * mask, 1e-12, 1e12)
    return jnp.sum(dist) / B


if __name__ == "__main__":
    # Small shapes consistent with the module: feat_dim=32, num_classes=16.
    num_classes, feat_dim = 16, 32

    key = jax.random.PRNGKey(0)
    k_x, k_c, k_l, k_x2, k_l2 = jax.random.split(key, 5)

    # Deterministic parameter init (stands in for nn.Parameter(torch.randn(C, D))).
    centers = jax.random.normal(k_c, (num_classes, feat_dim), dtype=jnp.float32)

    # Case 1: batch=8, default block_b (single B tile, no padding).
    x1 = jax.random.normal(k_x, (8, feat_dim), dtype=jnp.float32)
    l1 = jax.random.randint(k_l, (8,), 0, num_classes, dtype=jnp.int32)
    out1 = jax.block_until_ready(center_loss(x1, centers, l1))
    ref1 = jax.block_until_ready(center_loss_ref(x1, centers, l1))
    assert jnp.allclose(out1, ref1, rtol=1e-4, atol=1e-3), (out1, ref1)

    # Case 2: batch=20 with block_b=8 (3 tiles, batch padding + row masking).
    x2 = jax.random.normal(k_x2, (20, feat_dim), dtype=jnp.float32)
    l2 = jax.random.randint(k_l2, (20,), 0, num_classes, dtype=jnp.int32)
    out2 = jax.block_until_ready(center_loss(x2, centers, l2, block_b=8))
    ref2 = jax.block_until_ready(center_loss_ref(x2, centers, l2))
    assert jnp.allclose(out2, ref2, rtol=1e-4, atol=1e-3), (out2, ref2)

    print("KERNEL_OK")
</pallas_src>

<mosaic_0001>
module attributes {stable_mosaic.version = 11 : i64} {
  func.func @_center_loss_kernel(%arg0: i32, %arg1: memref<8xi32, #tpu.memory_space<smem>>, %arg2: memref<8x32xf32, #tpu.memory_space<vmem>>, %arg3: memref<16x32xf32, #tpu.memory_space<any>>, %arg4: memref<8x1xf32, #tpu.memory_space<vmem>>, %arg5: memref<8x32xf32, #tpu.memory_space<vmem>>, %arg6: memref<8x!tpu.dma_semaphore, #tpu.memory_space<semaphore_mem>>) attributes {dimension_semantics = [#tpu.dimension_semantics<parallel>], iteration_bounds = array<i64: 1>, scalar_prefetch = 1 : i64, scratch_operands = 2 : i64, tpu.core_type = #tpu.core_type<tc>, window_params = [{transform_indices = @transform_0, window_bounds = array<i64: 8, 32>}, {}, {transform_indices = @transform_2, window_bounds = array<i64: 8, 1>}]} {
    %c8_i32 = arith.constant 8 : i32
    %0 = arith.muli %arg0, %c8_i32 : i32
    %c0_i32 = arith.constant 0 : i32
    %1 = arith.addi %0, %c0_i32 : i32
    %2 = arith.index_cast %1 : i32 to index
    %3 = memref.load %arg1[%2] : memref<8xi32, #tpu.memory_space<smem>>
    %c0_i32_0 = arith.constant 0 : i32
    %4 = arith.maxsi %3, %c0_i32_0 : i32
    %c0_i32_1 = arith.constant 0 : i32
    %5 = tpu.memref_slice %arg3[%4, %c0_i32_1] : memref<16x32xf32, #tpu.memory_space<any>> -> memref<1x32xf32, #tpu.memory_space<any>>
    %c0_i32_2 = arith.constant 0 : i32
    %6 = tpu.memref_slice %arg5[%c0_i32, %c0_i32_2] : memref<8x32xf32, #tpu.memory_space<vmem>> -> memref<1x32xf32, #tpu.memory_space<vmem>>
    %7 = tpu.memref_slice %arg6[%c0_i32] : memref<8x!tpu.dma_semaphore, #tpu.memory_space<semaphore_mem>> -> memref<1x!tpu.dma_semaphore, #tpu.memory_space<semaphore_mem>>
    %8 = tpu.memref_squeeze %7 : memref<1x!tpu.dma_semaphore, #tpu.memory_space<semaphore_mem>> -> memref<!tpu.dma_semaphore, #tpu.memory_space<semaphore_mem>>
    tpu.enqueue_dma source(%5 : memref<1x32xf32, #tpu.memory_space<any>>) target(%6 : memref<1x32xf32, #tpu.memory_space<vmem>>) target_semaphore(%8 : memref<!tpu.dma_semaphore, #tpu.memory_space<semaphore_mem>>)
    %c1_i32 = arith.constant 1 : i32
    %9 = arith.addi %0, %c1_i32 : i32
    %10 = arith.index_cast %9 : i32 to index
    %11 = memref.load %arg1[%10] : memref<8xi32, #tpu.memory_space<smem>>
    %c0_i32_3 = arith.constant 0 : i32
    %12 = arith.maxsi %11, %c0_i32_3 : i32
    %c0_i32_4 = arith.constant 0 : i32
    %13 = tpu.memref_slice %arg3[%12, %c0_i32_4] : memref<16x32xf32, #tpu.memory_space<any>> -> memref<1x32xf32, #tpu.memory_space<any>>
    %c0_i32_5 = arith.constant 0 : i32
    %14 = tpu.memref_slice %arg5[%c1_i32, %c0_i32_5] : memref<8x32xf32, #tpu.memory_space<vmem>> -> memref<1x32xf32, #tpu.memory_space<vmem>>
    %15 = tpu.memref_slice %arg6[%c1_i32] : memref<8x!tpu.dma_semaphore, #tpu.memory_space<semaphore_mem>> -> memref<1x!tpu.dma_semaphore, #tpu.memory_space<semaphore_mem>>
    %16 = tpu.memref_squeeze %15 : memref<1x!tpu.dma_semaphore, #tpu.memory_space<semaphore_mem>> -> memref<!tpu.dma_semaphore, #tpu.memory_space<semaphore_mem>>
    tpu.enqueue_dma source(%13 : memref<1x32xf32, #tpu.memory_space<any>>) target(%14 : memref<1x32xf32, #tpu.memory_space<vmem>>) target_semaphore(%16 : memref<!tpu.dma_semaphore, #tpu.memory_space<semaphore_mem>>)
    %c2_i32 = arith.constant 2 : i32
    %17 = arith.addi %0, %c2_i32 : i32
    %18 = arith.index_cast %17 : i32 to index
    %19 = memref.load %arg1[%18] : memref<8xi32, #tpu.memory_space<smem>>
    %c0_i32_6 = arith.constant 0 : i32
    %20 = arith.maxsi %19, %c0_i32_6 : i32
    %c0_i32_7 = arith.constant 0 : i32
    %21 = tpu.memref_slice %arg3[%20, %c0_i32_7] : memref<16x32xf32, #tpu.memory_space<any>> -> memref<1x32xf32, #tpu.memory_space<any>>
    %c0_i32_8 = arith.constant 0 : i32
    %22 = tpu.memref_slice %arg5[%c2_i32, %c0_i32_8] : memref<8x32xf32, #tpu.memory_space<vmem>> -> memref<1x32xf32, #tpu.memory_space<vmem>>
    %23 = tpu.memref_slice %arg6[%c2_i32] : memref<8x!tpu.dma_semaphore, #tpu.memory_space<semaphore_mem>> -> memref<1x!tpu.dma_semaphore, #tpu.memory_space<semaphore_mem>>
    %24 = tpu.memref_squeeze %23 : memref<1x!tpu.dma_semaphore, #tpu.memory_space<semaphore_mem>> -> memref<!tpu.dma_semaphore, #tpu.memory_space<semaphore_mem>>
    tpu.enqueue_dma source(%21 : memref<1x32xf32, #tpu.memory_space<any>>) target(%22 : memref<1x32xf32, #tpu.memory_space<vmem>>) target_semaphore(%24 : memref<!tpu.dma_semaphore, #tpu.memory_space<semaphore_mem>>)
    %c3_i32 = arith.constant 3 : i32
    %25 = arith.addi %0, %c3_i32 : i32
    %26 = arith.index_cast %25 : i32 to index
    %27 = memref.load %arg1[%26] : memref<8xi32, #tpu.memory_space<smem>>
    %c0_i32_9 = arith.constant 0 : i32
    %28 = arith.maxsi %27, %c0_i32_9 : i32
    %c0_i32_10 = arith.constant 0 : i32
    %29 = tpu.memref_slice %arg3[%28, %c0_i32_10] : memref<16x32xf32, #tpu.memory_space<any>> -> memref<1x32xf32, #tpu.memory_space<any>>
    %c0_i32_11 = arith.constant 0 : i32
    %30 = tpu.memref_slice %arg5[%c3_i32, %c0_i32_11] : memref<8x32xf32, #tpu.memory_space<vmem>> -> memref<1x32xf32, #tpu.memory_space<vmem>>
    %31 = tpu.memref_slice %arg6[%c3_i32] : memref<8x!tpu.dma_semaphore, #tpu.memory_space<semaphore_mem>> -> memref<1x!tpu.dma_semaphore, #tpu.memory_space<semaphore_mem>>
    %32 = tpu.memref_squeeze %31 : memref<1x!tpu.dma_semaphore, #tpu.memory_space<semaphore_mem>> -> memref<!tpu.dma_semaphore, #tpu.memory_space<semaphore_mem>>
    tpu.enqueue_dma source(%29 : memref<1x32xf32, #tpu.memory_space<any>>) target(%30 : memref<1x32xf32, #tpu.memory_space<vmem>>) target_semaphore(%32 : memref<!tpu.dma_semaphore, #tpu.memory_space<semaphore_mem>>)
    %c4_i32 = arith.constant 4 : i32
    %33 = arith.addi %0, %c4_i32 : i32
    %34 = arith.index_cast %33 : i32 to index
    %35 = memref.load %arg1[%34] : memref<8xi32, #tpu.memory_space<smem>>
    %c0_i32_12 = arith.constant 0 : i32
    %36 = arith.maxsi %35, %c0_i32_12 : i32
    %c0_i32_13 = arith.constant 0 : i32
    %37 = tpu.memref_slice %arg3[%36, %c0_i32_13] : memref<16x32xf32, #tpu.memory_space<any>> -> memref<1x32xf32, #tpu.memory_space<any>>
    %c0_i32_14 = arith.constant 0 : i32
    %38 = tpu.memref_slice %arg5[%c4_i32, %c0_i32_14] : memref<8x32xf32, #tpu.memory_space<vmem>> -> memref<1x32xf32, #tpu.memory_space<vmem>>
    %39 = tpu.memref_slice %arg6[%c4_i32] : memref<8x!tpu.dma_semaphore, #tpu.memory_space<semaphore_mem>> -> memref<1x!tpu.dma_semaphore, #tpu.memory_space<semaphore_mem>>
    %40 = tpu.memref_squeeze %39 : memref<1x!tpu.dma_semaphore, #tpu.memory_space<semaphore_mem>> -> memref<!tpu.dma_semaphore, #tpu.memory_space<semaphore_mem>>
    tpu.enqueue_dma source(%37 : memref<1x32xf32, #tpu.memory_space<any>>) target(%38 : memref<1x32xf32, #tpu.memory_space<vmem>>) target_semaphore(%40 : memref<!tpu.dma_semaphore, #tpu.memory_space<semaphore_mem>>)
    %c5_i32 = arith.constant 5 : i32
    %41 = arith.addi %0, %c5_i32 : i32
    %42 = arith.index_cast %41 : i32 to index
    %43 = memref.load %arg1[%42] : memref<8xi32, #tpu.memory_space<smem>>
    %c0_i32_15 = arith.constant 0 : i32
    %44 = arith.maxsi %43, %c0_i32_15 : i32
    %c0_i32_16 = arith.constant 0 : i32
    %45 = tpu.memref_slice %arg3[%44, %c0_i32_16] : memref<16x32xf32, #tpu.memory_space<any>> -> memref<1x32xf32, #tpu.memory_space<any>>
    %c0_i32_17 = arith.constant 0 : i32
    %46 = tpu.memref_slice %arg5[%c5_i32, %c0_i32_17] : memref<8x32xf32, #tpu.memory_space<vmem>> -> memref<1x32xf32, #tpu.memory_space<vmem>>
    %47 = tpu.memref_slice %arg6[%c5_i32] : memref<8x!tpu.dma_semaphore, #tpu.memory_space<semaphore_mem>> -> memref<1x!tpu.dma_semaphore, #tpu.memory_space<semaphore_mem>>
    %48 = tpu.memref_squeeze %47 : memref<1x!tpu.dma_semaphore, #tpu.memory_space<semaphore_mem>> -> memref<!tpu.dma_semaphore, #tpu.memory_space<semaphore_mem>>
    tpu.enqueue_dma source(%45 : memref<1x32xf32, #tpu.memory_space<any>>) target(%46 : memref<1x32xf32, #tpu.memory_space<vmem>>) target_semaphore(%48 : memref<!tpu.dma_semaphore, #tpu.memory_space<semaphore_mem>>)
    %c6_i32 = arith.constant 6 : i32
    %49 = arith.addi %0, %c6_i32 : i32
    %50 = arith.index_cast %49 : i32 to index
    %51 = memref.load %arg1[%50] : memref<8xi32, #tpu.memory_space<smem>>
    %c0_i32_18 = arith.constant 0 : i32
    %52 = arith.maxsi %51, %c0_i32_18 : i32
    %c0_i32_19 = arith.constant 0 : i32
    %53 = tpu.memref_slice %arg3[%52, %c0_i32_19] : memref<16x32xf32, #tpu.memory_space<any>> -> memref<1x32xf32, #tpu.memory_space<any>>
    %c0_i32_20 = arith.constant 0 : i32
    %54 = tpu.memref_slice %arg5[%c6_i32, %c0_i32_20] : memref<8x32xf32, #tpu.memory_space<vmem>> -> memref<1x32xf32, #tpu.memory_space<vmem>>
    %55 = tpu.memref_slice %arg6[%c6_i32] : memref<8x!tpu.dma_semaphore, #tpu.memory_space<semaphore_mem>> -> memref<1x!tpu.dma_semaphore, #tpu.memory_space<semaphore_mem>>
    %56 = tpu.memref_squeeze %55 : memref<1x!tpu.dma_semaphore, #tpu.memory_space<semaphore_mem>> -> memref<!tpu.dma_semaphore, #tpu.memory_space<semaphore_mem>>
    tpu.enqueue_dma source(%53 : memref<1x32xf32, #tpu.memory_space<any>>) target(%54 : memref<1x32xf32, #tpu.memory_space<vmem>>) target_semaphore(%56 : memref<!tpu.dma_semaphore, #tpu.memory_space<semaphore_mem>>)
    %c7_i32 = arith.constant 7 : i32
    %57 = arith.addi %0, %c7_i32 : i32
    %58 = arith.index_cast %57 : i32 to index
    %59 = memref.load %arg1[%58] : memref<8xi32, #tpu.memory_space<smem>>
    %c0_i32_21 = arith.constant 0 : i32
    %60 = arith.maxsi %59, %c0_i32_21 : i32
    %c0_i32_22 = arith.constant 0 : i32
    %61 = tpu.memref_slice %arg3[%60, %c0_i32_22] : memref<16x32xf32, #tpu.memory_space<any>> -> memref<1x32xf32, #tpu.memory_space<any>>
    %c0_i32_23 = arith.constant 0 : i32
    %62 = tpu.memref_slice %arg5[%c7_i32, %c0_i32_23] : memref<8x32xf32, #tpu.memory_space<vmem>> -> memref<1x32xf32, #tpu.memory_space<vmem>>
    %63 = tpu.memref_slice %arg6[%c7_i32] : memref<8x!tpu.dma_semaphore, #tpu.memory_space<semaphore_mem>> -> memref<1x!tpu.dma_semaphore, #tpu.memory_space<semaphore_mem>>
    %64 = tpu.memref_squeeze %63 : memref<1x!tpu.dma_semaphore, #tpu.memory_space<semaphore_mem>> -> memref<!tpu.dma_semaphore, #tpu.memory_space<semaphore_mem>>
    tpu.enqueue_dma source(%61 : memref<1x32xf32, #tpu.memory_space<any>>) target(%62 : memref<1x32xf32, #tpu.memory_space<vmem>>) target_semaphore(%64 : memref<!tpu.dma_semaphore, #tpu.memory_space<semaphore_mem>>)
    %c8_i32_24 = arith.constant 8 : i32
    %c0_i32_25 = arith.constant 0 : i32
    %c0_i32_26 = arith.constant 0 : i32
    %c0_i32_27 = arith.constant 0 : i32
    %65 = tpu.memref_slice %arg3[%c0_i32_26, %c0_i32_27] : memref<16x32xf32, #tpu.memory_space<any>> -> memref<1x32xf32, #tpu.memory_space<any>>
    %c0_i32_28 = arith.constant 0 : i32
    %66 = tpu.memref_slice %arg5[%c0_i32_25, %c0_i32_28] : memref<8x32xf32, #tpu.memory_space<vmem>> -> memref<1x32xf32, #tpu.memory_space<vmem>>
    %67 = tpu.memref_slice %arg6[%c0_i32_25] : memref<8x!tpu.dma_semaphore, #tpu.memory_space<semaphore_mem>> -> memref<1x!tpu.dma_semaphore, #tpu.memory_space<semaphore_mem>>
    %68 = tpu.memref_squeeze %67 : memref<1x!tpu.dma_semaphore, #tpu.memory_space<semaphore_mem>> -> memref<!tpu.dma_semaphore, #tpu.memory_space<semaphore_mem>>
    tpu.wait_dma2 semaphore(%68 : memref<!tpu.dma_semaphore, #tpu.memory_space<semaphore_mem>>) src(%65 : memref<1x32xf32, #tpu.memory_space<any>>) dst(%66 : memref<1x32xf32, #tpu.memory_space<vmem>>)
    %c1_i32_29 = arith.constant 1 : i32
    %c0_i32_30 = arith.constant 0 : i32
    %c0_i32_31 = arith.constant 0 : i32
    %69 = tpu.memref_slice %arg3[%c0_i32_30, %c0_i32_31] : memref<16x32xf32, #tpu.memory_space<any>> -> memref<1x32xf32, #tpu.memory_space<any>>
    %c0_i32_32 = arith.constant 0 : i32
    %70 = tpu.memref_slice %arg5[%c1_i32_29, %c0_i32_32] : memref<8x32xf32, #tpu.memory_space<vmem>> -> memref<1x32xf32, #tpu.memory_space<vmem>>
    %71 = tpu.memref_slice %arg6[%c1_i32_29] : memref<8x!tpu.dma_semaphore, #tpu.memory_space<semaphore_mem>> -> memref<1x!tpu.dma_semaphore, #tpu.memory_space<semaphore_mem>>
    %72 = tpu.memref_squeeze %71 : memref<1x!tpu.dma_semaphore, #tpu.memory_space<semaphore_mem>> -> memref<!tpu.dma_semaphore, #tpu.memory_space<semaphore_mem>>
    tpu.wait_dma2 semaphore(%72 : memref<!tpu.dma_semaphore, #tpu.memory_space<semaphore_mem>>) src(%69 : memref<1x32xf32, #tpu.memory_space<any>>) dst(%70 : memref<1x32xf32, #tpu.memory_space<vmem>>)
    %c2_i32_33 = arith.constant 2 : i32
    %c0_i32_34 = arith.constant 0 : i32
    %c0_i32_35 = arith.constant 0 : i32
    %73 = tpu.memref_slice %arg3[%c0_i32_34, %c0_i32_35] : memref<16x32xf32, #tpu.memory_space<any>> -> memref<1x32xf32, #tpu.memory_space<any>>
    %c0_i32_36 = arith.constant 0 : i32
    %74 = tpu.memref_slice %arg5[%c2_i32_33, %c0_i32_36] : memref<8x32xf32, #tpu.memory_space<vmem>> -> memref<1x32xf32, #tpu.memory_space<vmem>>
    %75 = tpu.memref_slice %arg6[%c2_i32_33] : memref<8x!tpu.dma_semaphore, #tpu.memory_space<semaphore_mem>> -> memref<1x!tpu.dma_semaphore, #tpu.memory_space<semaphore_mem>>
    %76 = tpu.memref_squeeze %75 : memref<1x!tpu.dma_semaphore, #tpu.memory_space<semaphore_mem>> -> memref<!tpu.dma_semaphore, #tpu.memory_space<semaphore_mem>>
    tpu.wait_dma2 semaphore(%76 : memref<!tpu.dma_semaphore, #tpu.memory_space<semaphore_mem>>) src(%73 : memref<1x32xf32, #tpu.memory_space<any>>) dst(%74 : memref<1x32xf32, #tpu.memory_space<vmem>>)
    %c3_i32_37 = arith.constant 3 : i32
    %c0_i32_38 = arith.constant 0 : i32
    %c0_i32_39 = arith.constant 0 : i32
    %77 = tpu.memref_slice %arg3[%c0_i32_38, %c0_i32_39] : memref<16x32xf32, #tpu.memory_space<any>> -> memref<1x32xf32, #tpu.memory_space<any>>
    %c0_i32_40 = arith.constant 0 : i32
    %78 = tpu.memref_slice %arg5[%c3_i32_37, %c0_i32_40] : memref<8x32xf32, #tpu.memory_space<vmem>> -> memref<1x32xf32, #tpu.memory_space<vmem>>
    %79 = tpu.memref_slice %arg6[%c3_i32_37] : memref<8x!tpu.dma_semaphore, #tpu.memory_space<semaphore_mem>> -> memref<1x!tpu.dma_semaphore, #tpu.memory_space<semaphore_mem>>
    %80 = tpu.memref_squeeze %79 : memref<1x!tpu.dma_semaphore, #tpu.memory_space<semaphore_mem>> -> memref<!tpu.dma_semaphore, #tpu.memory_space<semaphore_mem>>
    tpu.wait_dma2 semaphore(%80 : memref<!tpu.dma_semaphore, #tpu.memory_space<semaphore_mem>>) src(%77 : memref<1x32xf32, #tpu.memory_space<any>>) dst(%78 : memref<1x32xf32, #tpu.memory_space<vmem>>)
    %c4_i32_41 = arith.constant 4 : i32
    %c0_i32_42 = arith.constant 0 : i32
    %c0_i32_43 = arith.constant 0 : i32
    %81 = tpu.memref_slice %arg3[%c0_i32_42, %c0_i32_43] : memref<16x32xf32, #tpu.memory_space<any>> -> memref<1x32xf32, #tpu.memory_space<any>>
    %c0_i32_44 = arith.constant 0 : i32
    %82 = tpu.memref_slice %arg5[%c4_i32_41, %c0_i32_44] : memref<8x32xf32, #tpu.memory_space<vmem>> -> memref<1x32xf32, #tpu.memory_space<vmem>>
    %83 = tpu.memref_slice %arg6[%c4_i32_41] : memref<8x!tpu.dma_semaphore, #tpu.memory_space<semaphore_mem>> -> memref<1x!tpu.dma_semaphore, #tpu.memory_space<semaphore_mem>>
    %84 = tpu.memref_squeeze %83 : memref<1x!tpu.dma_semaphore, #tpu.memory_space<semaphore_mem>> -> memref<!tpu.dma_semaphore, #tpu.memory_space<semaphore_mem>>
    tpu.wait_dma2 semaphore(%84 : memref<!tpu.dma_semaphore, #tpu.memory_space<semaphore_mem>>) src(%81 : memref<1x32xf32, #tpu.memory_space<any>>) dst(%82 : memref<1x32xf32, #tpu.memory_space<vmem>>)
    %c5_i32_45 = arith.constant 5 : i32
    %c0_i32_46 = arith.constant 0 : i32
    %c0_i32_47 = arith.constant 0 : i32
    %85 = tpu.memref_slice %arg3[%c0_i32_46, %c0_i32_47] : memref<16x32xf32, #tpu.memory_space<any>> -> memref<1x32xf32, #tpu.memory_space<any>>
    %c0_i32_48 = arith.constant 0 : i32
    %86 = tpu.memref_slice %arg5[%c5_i32_45, %c0_i32_48] : memref<8x32xf32, #tpu.memory_space<vmem>> -> memref<1x32xf32, #tpu.memory_space<vmem>>
    %87 = tpu.memref_slice %arg6[%c5_i32_45] : memref<8x!tpu.dma_semaphore, #tpu.memory_space<semaphore_mem>> -> memref<1x!tpu.dma_semaphore, #tpu.memory_space<semaphore_mem>>
    %88 = tpu.memref_squeeze %87 : memref<1x!tpu.dma_semaphore, #tpu.memory_space<semaphore_mem>> -> memref<!tpu.dma_semaphore, #tpu.memory_space<semaphore_mem>>
    tpu.wait_dma2 semaphore(%88 : memref<!tpu.dma_semaphore, #tpu.memory_space<semaphore_mem>>) src(%85 : memref<1x32xf32, #tpu.memory_space<any>>) dst(%86 : memref<1x32xf32, #tpu.memory_space<vmem>>)
    %c6_i32_49 = arith.constant 6 : i32
    %c0_i32_50 = arith.constant 0 : i32
    %c0_i32_51 = arith.constant 0 : i32
    %89 = tpu.memref_slice %arg3[%c0_i32_50, %c0_i32_51] : memref<16x32xf32, #tpu.memory_space<any>> -> memref<1x32xf32, #tpu.memory_space<any>>
    %c0_i32_52 = arith.constant 0 : i32
    %90 = tpu.memref_slice %arg5[%c6_i32_49, %c0_i32_52] : memref<8x32xf32, #tpu.memory_space<vmem>> -> memref<1x32xf32, #tpu.memory_space<vmem>>
    %91 = tpu.memref_slice %arg6[%c6_i32_49] : memref<8x!tpu.dma_semaphore, #tpu.memory_space<semaphore_mem>> -> memref<1x!tpu.dma_semaphore, #tpu.memory_space<semaphore_mem>>
    %92 = tpu.memref_squeeze %91 : memref<1x!tpu.dma_semaphore, #tpu.memory_space<semaphore_mem>> -> memref<!tpu.dma_semaphore, #tpu.memory_space<semaphore_mem>>
    tpu.wait_dma2 semaphore(%92 : memref<!tpu.dma_semaphore, #tpu.memory_space<semaphore_mem>>) src(%89 : memref<1x32xf32, #tpu.memory_space<any>>) dst(%90 : memref<1x32xf32, #tpu.memory_space<vmem>>)
    %c7_i32_53 = arith.constant 7 : i32
    %c0_i32_54 = arith.constant 0 : i32
    %c0_i32_55 = arith.constant 0 : i32
    %93 = tpu.memref_slice %arg3[%c0_i32_54, %c0_i32_55] : memref<16x32xf32, #tpu.memory_space<any>> -> memref<1x32xf32, #tpu.memory_space<any>>
    %c0_i32_56 = arith.constant 0 : i32
    %94 = tpu.memref_slice %arg5[%c7_i32_53, %c0_i32_56] : memref<8x32xf32, #tpu.memory_space<vmem>> -> memref<1x32xf32, #tpu.memory_space<vmem>>
    %95 = tpu.memref_slice %arg6[%c7_i32_53] : memref<8x!tpu.dma_semaphore, #tpu.memory_space<semaphore_mem>> -> memref<1x!tpu.dma_semaphore, #tpu.memory_space<semaphore_mem>>
    %96 = tpu.memref_squeeze %95 : memref<1x!tpu.dma_semaphore, #tpu.memory_space<semaphore_mem>> -> memref<!tpu.dma_semaphore, #tpu.memory_space<semaphore_mem>>
    tpu.wait_dma2 semaphore(%96 : memref<!tpu.dma_semaphore, #tpu.memory_space<semaphore_mem>>) src(%93 : memref<1x32xf32, #tpu.memory_space<any>>) dst(%94 : memref<1x32xf32, #tpu.memory_space<vmem>>)
    %c8_i32_57 = arith.constant 8 : i32
    %c0 = arith.constant 0 : index
    %c0_58 = arith.constant 0 : index
    %97 = vector.load %arg2[%c0, %c0_58] : memref<8x32xf32, #tpu.memory_space<vmem>>, vector<8x32xf32>
    %c0_59 = arith.constant 0 : index
    %c0_60 = arith.constant 0 : index
    %98 = vector.load %arg5[%c0_59, %c0_60] : memref<8x32xf32, #tpu.memory_space<vmem>>, vector<8x32xf32>
    %99 = arith.subf %97, %98 : vector<8x32xf32>
    %100 = arith.mulf %99, %99 : vector<8x32xf32>
    %cst = arith.constant dense<0.000000e+00> : vector<8xf32>
    %101 = vector.multi_reduction <add>, %100, %cst [1] : vector<8x32xf32> to vector<8xf32>
    %102 = vector.shape_cast %101 : vector<8xf32> to vector<8x1xf32>
    %cst_61 = arith.constant 9.99999996E-13 : f32
    %cst_62 = arith.constant 9.99999995E+11 : f32
    %103 = vector.broadcast %cst_61 : f32 to vector<8x1xf32>
    %104 = arith.maximumf %103, %102 : vector<8x1xf32>
    %105 = vector.broadcast %cst_62 : f32 to vector<8x1xf32>
    %106 = arith.minimumf %105, %104 : vector<8x1xf32>
    %107 = tpu.iota {dimensions = array<i32: 0>} : vector<8x1xi32>
    %108 = vector.broadcast %0 : i32 to vector<8x1xi32>
    %109 = arith.addi %107, %108 : vector<8x1xi32>
    %c8_i32_63 = arith.constant 8 : i32
    %110 = vector.broadcast %c8_i32_63 : i32 to vector<8x1xi32>
    %111 = arith.cmpi slt, %109, %110 : vector<8x1xi32>
    %112 = arith.extui %111 : vector<8x1xi1> to vector<8x1xi32>
    %113 = arith.sitofp %112 : vector<8x1xi32> to vector<8x1xf32>
    %114 = arith.mulf %106, %113 : vector<8x1xf32>
    %c0_64 = arith.constant 0 : index
    %c0_65 = arith.constant 0 : index
    %115 = vector.load %arg4[%c0_64, %c0_65] : memref<8x1xf32, #tpu.memory_space<vmem>>, vector<8x1xf32>
    tpu.vector_store %arg4[%c0_64, %c0_65], %114 {strides = array<i32>} : memref<8x1xf32, #tpu.memory_space<vmem>>, vector<8x1xf32>,
    return
  }
  func.func @transform_0(%arg0: i32, %arg1: memref<8xi32, #tpu.memory_space<smem>>) -> (i32, i32) {
    %c0_i32 = arith.constant 0 : i32
    %c0_i32_0 = arith.constant 0 : i32
    return %arg0, %c0_i32 : i32, i32
  }
  func.func @transform_2(%arg0: i32, %arg1: memref<8xi32, #tpu.memory_space<smem>>) -> (i32, i32) {
    %c0_i32 = arith.constant 0 : i32
    %c0_i32_0 = arith.constant 0 : i32
    return %arg0, %c0_i32 : i32, i32
  }
}

</mosaic_0001>

<bundles_post_ra>
// kernel: tpu_custom_call.1
= control target key start
LH: loop header
LB: loop body
LE: loop exit
PB: predicated region body
PF: predicated region fallthrough
CT: control target
= control target key end

     0   :  { %s568_s15 = smov [#allocation5]   ;;  %s712_s0 = inlined_call_operand.hbm [shape: s32[8], index: 0, kind: input, shape index: {}]   ;;  %s713_s1 = inlined_call_operand.hbm [shape: f32[8,32], index: 1, kind: input, shape index: {}]   ;;  %s714_s2 = inlined_call_operand.hbm [shape: f32[16,32], index: 2, kind: input, shape index: {}]   ;;  %s715_s3 = inlined_call_operand.vmem [shape: f32[8,1], index: 3, kind: output, shape index: {}]  }
   0x1   :  { %s9_s14 = sshll.u32 %s712_s0, 4  ;;  %s10_s14 = int_to_ptr.hbm [resolvable:$true] %s9_s14 }
   0x2   :  { %12 = dma.hbm_to_smem %s10_s14, 16, %s568_s15, [#allocation4] }
   0x3   :  { %548 = dma.done.wait [#allocation4], 16 }
   0x4   :  { %549 = vsyncadd [#allocation4], 4294967280 }
   0x5   :  { %15 = sfence }
   0x6   :  { %16 = vsyncpa [#allocation7], 0  ;;  %s22_s18 = sshll.u32 %s713_s1, 4  ;;  %s569_s19 = smov [#allocation6]   ;;  %s23_s18 = int_to_ptr.hbm [resolvable:$true] %s22_s18 }
   0x7   :  { %s24_s20 = sshll.u32 %s569_s19, 4  ;;  %s25_s20 = int_to_ptr.vmem [resolvable:$true] %s24_s20 }
   0x8   :  { %27 = dma.hbm_to_vmem [thread:$0]  %s23_s18, 128, %s25_s20, [#allocation7]  }
   0x9   :  { %550 = dma.done.wait [#allocation7], 128  }
   0xa   :  { %551 = vsyncadd [#allocation7], 4294967168  ;;  %s33_s21 = sld [smem:[#allocation5]]  ;;  %s570_s0 = smov [#allocation2]  }
   0xb   :  { %s604_s22 = sshll.u32 %s570_s0, 4  ;;  %s295_s23 = sld [smem:[#allocation5 + $0x1]]  ;;  %s47_s22 = int_to_ptr.vmem [resolvable:$true] %s604_s22 }
   0xc   :  { %s571_s24 = smov [#allocation2 + $0x1]   ;;  %s609_s26 = sld [smem:[#allocation5 + $0x2]] }
   0xd   :  { %s607_s25 = sshll.u32 %s571_s24, 4  ;;  %s572_s1 = smov [#allocation2 + $0x2]   ;;  %s67_s25 = int_to_ptr.vmem [resolvable:$true] %s607_s25 }
   0xe   :  { %s612_s27 = sshll.u32 %s572_s1, 4  ;;  %s614_s28 = sld [smem:[#allocation5 + $0x3]]  ;;  %s87_s27 = int_to_ptr.vmem [resolvable:$true] %s612_s27 }
   0xf   :  { %s573_s29 = smov [#allocation2 + $0x3]   ;;  %s630_s16 = scalar_lea.hbm %s714_s2, 16 }
  0x10   :  { %p34_p0 = scmp.gt.s32.totalorder %s33_s21, 0  ;;  %s617_s30 = sshll.u32 %s573_s29, 4  ;;  %s107_s30 = int_to_ptr.vmem [resolvable:$true] %s617_s30 }
  0x11   :  { %p52_p1 = scmp.gt.s32.totalorder %s295_s23, 0 }
  0x12   :  { %s717_s21 = smov (!%p34_p0, %s33_s21), 0  ;;  %p72_p2 = scmp.gt.s32.totalorder %s609_s26, 0 }
  0x13   :  { %s719_s23 = smov (!%p52_p1, %s295_s23), 0  ;;  %s36_s6 = scalar_lea.hbm %s714_s2, %s717_s21 }
  0x14   :  { %s44_s7 = sshll.u32 %s36_s6, 4  ;;  %s54_s10 = scalar_lea.hbm %s714_s2, %s719_s23  ;;  %s45_s7 = int_to_ptr.hbm [resolvable:$true] %s44_s7 }
  0x15   :  { %s64_s11 = sshll.u32 %s54_s10, 4  ;;  %s356_s12 = sshra.s32 %s45_s7, 4  ;;  %s357_s12 = int_to_ptr.hbm [resolvable:$true] %s356_s12  ;;  %s65_s11 = int_to_ptr.hbm [resolvable:$true] %s64_s11 }
  0x16   :  { %s358_s13 = scalar_lea.hbm %s357_s12, 1  ;;  %p361_p4 = scmp.lt.s32.totalorder %s357_s12, %s714_s2 }
  0x17   :  { %p359_p3 = scmp.ne.s32.totalorder %s357_s12, %s358_s13  ;;  %p362_p5 = scmp.lt.s32.totalorder %s630_s16, %s358_s13 }
  0x19   :  { %p363_p6 = por %p362_p5, %p361_p4 }
  0x1b   :  { %p364_p7 = pnand %p363_p6, %p359_p3 }
  0x1d   :  { %367 = shalt.err (!%p364_p7)  }
  0x1e   :  { %49 = dma.hbm_to_vmem [thread:$0]  %s45_s7, 16, %s47_s22, [#allocation3] }
  0x1f   :  { %p92_p8 = scmp.gt.s32.totalorder %s614_s28, 0  ;;  %s380_s19 = sshra.s32 %s65_s11, 4  ;;  %s381_s19 = int_to_ptr.hbm [resolvable:$true] %s380_s19 }
  0x20   :  { %s382_s20 = scalar_lea.hbm %s381_s19, 1  ;;  %p385_p10 = scmp.lt.s32.totalorder %s381_s19, %s714_s2 }
  0x21   :  { %p383_p9 = scmp.ne.s32.totalorder %s381_s19, %s382_s20  ;;  %p386_p11 = scmp.lt.s32.totalorder %s630_s16, %s382_s20 }
  0x23   :  { %p387_p12 = por %p386_p11, %p385_p10 }
  0x25   :  { %p388_p13 = pnand %p387_p12, %p383_p9 }
  0x27   :  { %391 = shalt.err (!%p388_p13)  }
  0x28   :  { %69 = dma.hbm_to_vmem [thread:$0]  %s65_s11, 16, %s67_s25, [#allocation3 + $0x1] }
  0x29   :  { %s721_s26 = smov (!%p72_p2, %s609_s26), 0  ;;  %s723_s28 = smov (!%p92_p8, %s614_s28), 0 }
  0x2a   :  { %s74_s24 = scalar_lea.hbm %s714_s2, %s721_s26  ;;  %s652_s1 = sld [smem:[#allocation5 + $0x4]] }
  0x2b   :  { %s84_s29 = sshll.u32 %s74_s24, 4  ;;  %s94_s6 = scalar_lea.hbm %s714_s2, %s723_s28  ;;  %s85_s29 = int_to_ptr.hbm [resolvable:$true] %s84_s29 }
  0x2c   :  { %s104_s7 = sshll.u32 %s94_s6, 4  ;;  %s404_s8 = sshra.s32 %s85_s29, 4  ;;  %s405_s8 = int_to_ptr.hbm [resolvable:$true] %s404_s8  ;;  %s105_s7 = int_to_ptr.hbm [resolvable:$true] %s104_s7 }
  0x2d   :  { %s406_s9 = scalar_lea.hbm %s405_s8, 1  ;;  %p409_p1 = scmp.lt.s32.totalorder %s405_s8, %s714_s2 }
  0x2e   :  { %p407_p0 = scmp.ne.s32.totalorder %s405_s8, %s406_s9  ;;  %p410_p2 = scmp.lt.s32.totalorder %s630_s16, %s406_s9 }
  0x30   :  { %p411_p3 = por %p410_p2, %p409_p1 }
  0x32   :  { %p412_p4 = pnand %p411_p3, %p407_p0 }
  0x34   :  { %415 = shalt.err (!%p412_p4)  }
  0x35   :  { %89 = dma.hbm_to_vmem [thread:$0]  %s85_s29, 16, %s87_s27, [#allocation3 + $0x2] }
  0x36   :  { %s428_s26 = sshra.s32 %s105_s7, 4  ;;  %s429_s26 = int_to_ptr.hbm [resolvable:$true] %s428_s26 }
  0x37   :  { %s430_s28 = scalar_lea.hbm %s429_s26, 1  ;;  %p433_p6 = scmp.lt.s32.totalorder %s429_s26, %s714_s2 }
  0x38   :  { %p431_p5 = scmp.ne.s32.totalorder %s429_s26, %s430_s28  ;;  %p434_p7 = scmp.lt.s32.totalorder %s630_s16, %s430_s28 }
  0x3a   :  { %p435_p8 = por %p434_p7, %p433_p6 }
  0x3c   :  { %p436_p9 = pnand %p435_p8, %p431_p5 }
  0x3e   :  { %439 = shalt.err (!%p436_p9)  }
  0x3f   :  { %109 = dma.hbm_to_vmem [thread:$0]  %s105_s7, 16, %s107_s30, [#allocation3 + $0x3] }
  0x40   :  { %p112_p10 = scmp.gt.s32.totalorder %s652_s1, 0  ;;  %s574_s27 = smov [#allocation2 + $0x4]  }
  0x41   :  { %s126_s13 = sshll.u32 %s574_s27, 4  ;;  %s299_s14 = sld [smem:[#allocation5 + $0x5]]  ;;  %s127_s13 = int_to_ptr.vmem [resolvable:$true] %s126_s13 }
  0x42   :  { %s725_s1 = smov (!%p112_p10, %s652_s1), 0  ;;  %s300_s15 = sld [smem:[#allocation5 + $0x6]] }
  0x43   :  { %s114_s19 = scalar_lea.hbm %s714_s2, %s725_s1  ;;  %s575_s20 = smov [#allocation2 + $0x5]  }
  0x44   :  { %s674_s21 = sshll.u32 %s575_s20, 4  ;;  %s124_s0 = sshll.u32 %s114_s19, 4  ;;  %s147_s21 = int_to_ptr.vmem [resolvable:$true] %s674_s21  ;;  %s125_s0 = int_to_ptr.hbm [resolvable:$true] %s124_s0 }
  0x45   :  { %s452_s30 = sshra.s32 %s125_s0, 4  ;;  %s453_s30 = int_to_ptr.hbm [resolvable:$true] %s452_s30 }
  0x46   :  { %s454_s22 = scalar_lea.hbm %s453_s30, 1  ;;  %p457_p12 = scmp.lt.s32.totalorder %s453_s30, %s714_s2 }
  0x47   :  { %p455_p11 = scmp.ne.s32.totalorder %s453_s30, %s454_s22  ;;  %p458_p13 = scmp.lt.s32.totalorder %s630_s16, %s454_s22 }
  0x49   :  { %p459_p0 = por %p458_p13, %p457_p12 }
  0x4b   :  { %p460_p1 = pnand %p459_p0, %p455_p11 }
  0x4d   :  { %463 = shalt.err (!%p460_p1)  }
  0x4e   :  { %129 = dma.hbm_to_vmem [thread:$0]  %s125_s0, 16, %s127_s13, [#allocation3 + $0x4] }
  0x4f   :  { %p132_p2 = scmp.gt.s32.totalorder %s299_s14, 0  ;;  %s576_s1 = smov [#allocation2 + $0x6]  }
  0x50   :  { %s681_s29 = sshll.u32 %s576_s1, 4  ;;  %p152_p3 = scmp.gt.s32.totalorder %s300_s15, 0  ;;  %s167_s29 = int_to_ptr.vmem [resolvable:$true] %s681_s29 }
  0x51   :  { %s727_s14 = smov (!%p132_p2, %s299_s14), 0  ;;  %s301_s7 = sld [smem:[#allocation5 + $0x7]] }
  0x52   :  { %s729_s15 = smov (!%p152_p3, %s300_s15), 0  ;;  %s134_s6 = scalar_lea.hbm %s714_s2, %s727_s14 }
  0x53   :  { %s144_s8 = sshll.u32 %s134_s6, 4  ;;  %s154_s10 = scalar_lea.hbm %s714_s2, %s729_s15  ;;  %s145_s8 = int_to_ptr.hbm [resolvable:$true] %s144_s8 }
  0x54   :  { %s164_s26 = sshll.u32 %s154_s10, 4  ;;  %s476_s28 = sshra.s32 %s145_s8, 4  ;;  %s477_s28 = int_to_ptr.hbm [resolvable:$true] %s476_s28  ;;  %s165_s26 = int_to_ptr.hbm [resolvable:$true] %s164_s26 }
  0x55   :  { %s478_s11 = scalar_lea.hbm %s477_s28, 1  ;;  %p481_p5 = scmp.lt.s32.totalorder %s477_s28, %s714_s2 }
  0x56   :  { %p479_p4 = scmp.ne.s32.totalorder %s477_s28, %s478_s11  ;;  %p482_p6 = scmp.lt.s32.totalorder %s630_s16, %s478_s11 }
  0x58   :  { %p483_p7 = por %p482_p6, %p481_p5 }
  0x5a   :  { %p484_p8 = pnand %p483_p7, %p479_p4 }
  0x5c   :  { %487 = shalt.err (!%p484_p8)  }
  0x5d   :  { %149 = dma.hbm_to_vmem [thread:$0]  %s145_s8, 16, %s147_s21, [#allocation3 + $0x5] }
  0x5e   :  { %s500_s13 = sshra.s32 %s165_s26, 4  ;;  %s501_s13 = int_to_ptr.hbm [resolvable:$true] %s500_s13 }
  0x5f   :  { %s502_s14 = scalar_lea.hbm %s501_s13, 1  ;;  %p505_p10 = scmp.lt.s32.totalorder %s501_s13, %s714_s2 }
  0x60   :  { %p503_p9 = scmp.ne.s32.totalorder %s501_s13, %s502_s14  ;;  %p506_p11 = scmp.lt.s32.totalorder %s630_s16, %s502_s14 }
  0x62   :  { %p507_p12 = por %p506_p11, %p505_p10 }
  0x64   :  { %p508_p13 = pnand %p507_p12, %p503_p9 }
  0x66   :  { %511 = shalt.err (!%p508_p13)  }
  0x67   :  { %169 = dma.hbm_to_vmem [thread:$0]  %s165_s26, 16, %s167_s29, [#allocation3 + $0x6] }
  0x68   :  { %p172_p0 = scmp.gt.s32.totalorder %s301_s7, 0  ;;  %s577_s18 = smov [#allocation2 + $0x7]  }
  0x69   :  { %s186_s19 = sshll.u32 %s577_s18, 4  ;;  %s187_s19 = int_to_ptr.vmem [resolvable:$true] %s186_s19 }
  0x6a   :  { %s731_s7 = smov (!%p172_p0, %s301_s7), 0 }
  0x6b   :  { %s174_s0 = scalar_lea.hbm %s714_s2, %s731_s7 }
  0x6c   :  { %s184_s30 = sshll.u32 %s174_s0, 4  ;;  %s185_s30 = int_to_ptr.hbm [resolvable:$true] %s184_s30 }
  0x6d   :  { %s524_s22 = sshra.s32 %s185_s30, 4  ;;  %s525_s22 = int_to_ptr.hbm [resolvable:$true] %s524_s22 }
  0x6e   :  { %s526_s23 = scalar_lea.hbm %s525_s22, 1  ;;  %p529_p2 = scmp.lt.s32.totalorder %s525_s22, %s714_s2 }
  0x6f   :  { %p527_p1 = scmp.ne.s32.totalorder %s525_s22, %s526_s23  ;;  %p530_p3 = scmp.lt.s32.totalorder %s630_s16, %s526_s23 }
  0x71   :  { %p531_p4 = por %p530_p3, %p529_p2 }
  0x73   :  { %p532_p5 = pnand %p531_p4, %p527_p1 }
  0x75   :  { %535 = shalt.err (!%p532_p5)  }
  0x76   :  { %189 = dma.hbm_to_vmem [thread:$0]  %s185_s30, 16, %s187_s19, [#allocation3 + $0x7] }
  0x77   :  { %552 = dma.done.wait [#allocation3], 16 }
  0x78   :  { %553 = vsyncadd [#allocation3], 4294967280 }
  0x79   :  { %554 = dma.done.wait [#allocation3 + $0x1], 16 }
  0x7a   :  { %555 = vsyncadd [#allocation3 + $0x1], 4294967280 }
  0x7b   :  { %556 = dma.done.wait [#allocation3 + $0x2], 16 }
  0x7c   :  { %557 = vsyncadd [#allocation3 + $0x2], 4294967280 }
  0x7d   :  { %558 = dma.done.wait [#allocation3 + $0x3], 16 }
  0x7e   :  { %559 = vsyncadd [#allocation3 + $0x3], 4294967280 }
  0x7f   :  { %560 = dma.done.wait [#allocation3 + $0x4], 16 }
  0x80   :  { %561 = vsyncadd [#allocation3 + $0x4], 4294967280 }
  0x81   :  { %562 = dma.done.wait [#allocation3 + $0x5], 16 }
  0x82   :  { %563 = vsyncadd [#allocation3 + $0x5], 4294967280 }
  0x83   :  { %564 = dma.done.wait [#allocation3 + $0x6], 16 }
  0x84   :  { %565 = vsyncadd [#allocation3 + $0x6], 4294967280 }
  0x85   :  { %566 = dma.done.wait [#allocation3 + $0x7], 16 }
  0x86   :  { %567 = vsyncadd [#allocation3 + $0x7], 4294967280  ;;  %v207_v0 = vld [vmem:[#allocation6] sm:$0xff]  ;;  %v208_v1 = vld [vmem:[#allocation2] sm:$0xff]  ;;  %vm211_vm0 = vcmask 261120   ;;  %vm225_vm1 = vcmask 7168  }
  0x87   :  { %v209_v2 = vsub.f32 %v207_v0, %v208_v1 }
  0x89   :  { %v210_v3 = vmul.f32 %v209_v2, %v209_v2 }
  0x8b   :  { %v212_v4 = vsel %vm211_vm0, %v210_v3, 0.0 }
  0x8c   :  { %213 = vadd.xlane.f32.xlu0 %v212_v4 }
  0xff   :  { %v214_v5 = vpop.xlane.xlu0 %213 }
 0x100   :  { %v215_v6 = vmax.f32 %v214_v5, 1e-12 }
 0x102   :  { %v216_v7 = vmin.f32 %v215_v6, 1e+12 }
 0x104   :  { %226 = vst.msk [vmem:[%s715_s3] sm:$0xff] %vm225_vm1, %v216_v7 }
 0x105   :  { %231 = vsyncpa [#allocation7], 1 }
 0x106   :  { %232 = vsyncmov [#allocation3] }
 0x109   :  { %s233_s29 = vpop.sfrf %232 }
 0x10a   :  { %p302_p6 = scmp.ne.s32.totalorder %s233_s29, 0 }
 0x10c   :  { %237 = shalt.err (%p302_p6)  }
 0x10d   :  { %239 = vsyncmov [#allocation3 + $0x1] }
 0x110   :  { %s240_s4 = vpop.sfrf %239 }
 0x111   :  { %p303_p7 = scmp.ne.s32.totalorder %s240_s4, 0 }
 0x113   :  { %244 = shalt.err (%p303_p7)  }
 0x114   :  { %246 = vsyncmov [#allocation3 + $0x2] }
 0x117   :  { %s247_s5 = vpop.sfrf %246 }
 0x118   :  { %p304_p8 = scmp.ne.s32.totalorder %s247_s5, 0 }
 0x11a   :  { %251 = shalt.err (%p304_p8)  }
 0x11b   :  { %253 = vsyncmov [#allocation3 + $0x3] }
 0x11e   :  { %s254_s6 = vpop.sfrf %253 }
 0x11f   :  { %p305_p9 = scmp.ne.s32.totalorder %s254_s6, 0 }
 0x121   :  { %258 = shalt.err (%p305_p9)  }
 0x122   :  { %260 = vsyncmov [#allocation3 + $0x4] }
 0x125   :  { %s261_s7 = vpop.sfrf %260 }
 0x126   :  { %p306_p10 = scmp.ne.s32.totalorder %s261_s7, 0 }
 0x128   :  { %265 = shalt.err (%p306_p10)  }
 0x129   :  { %267 = vsyncmov [#allocation3 + $0x5] }
 0x12c   :  { %s268_s3 = vpop.sfrf %267 }
 0x12d   :  { %p307_p11 = scmp.ne.s32.totalorder %s268_s3, 0 }
 0x12f   :  { %272 = shalt.err (%p307_p11)  }
 0x130   :  { %274 = vsyncmov [#allocation3 + $0x6] }
 0x133   :  { %s275_s8 = vpop.sfrf %274 }
 0x134   :  { %p308_p12 = scmp.ne.s32.totalorder %s275_s8, 0 }
 0x136   :  { %279 = shalt.err (%p308_p12)  }
 0x137   :  { %281 = vsyncmov [#allocation3 + $0x7] }
 0x13a   :  { %s282_s9 = vpop.sfrf %281 }
 0x13b   :  { %p309_p13 = scmp.ne.s32.totalorder %s282_s9, 0 }
 0x13d   :  { %286 = shalt.err (%p309_p13)  }

</bundles_post_ra>
